<compile_context>
chip_gen: v5e
topology: v5e:2x2
jax: 0.10.0
libtpu: 0.0.40
codegen_flags: <defaults>
</compile_context>

<pallas_src>
import functools

import jax
import jax.numpy as jnp
import numpy as np
from jax import lax
from jax.experimental import pallas as pl
from jax.experimental.pallas import tpu as pltpu


# ----------------------------- kernels --------------------------------------


def _mean_readout_kernel(seq_ref, out_ref, acc_ref, *, n_total, tn, inv_n):
    """Accumulate sum_n(seq) over the N grid axis; scale by 1/N at the end."""
    k = pl.program_id(1)

    @pl.when(k == 0)
    def _():
        acc_ref[...] = jnp.zeros_like(acc_ref)

    seq = seq_ref[...].astype(jnp.float32)                     # (B, tn, td)
    if n_total % tn != 0:                                      # tail block mask
        rows_left = n_total - k * tn
        row_ids = lax.broadcasted_iota(
            jnp.int32, (seq.shape[0], seq.shape[1], 1), 1)
        seq = jnp.where(row_ids < rows_left, seq, 0.0)
    acc_ref[...] += jnp.sum(seq, axis=1)                       # (B, td)

    @pl.when(k == pl.num_programs(1) - 1)
    def _():
        out_ref[...] = (acc_ref[...] * jnp.float32(inv_n)).astype(out_ref.dtype)


def _masked_readout_kernel(msum_ref, seq_ref, msk_ref, out_ref, acc_ref,
                           *, n_total, tn):
    """Accumulate sum_n(seq * msk); divide by the prefetched global sum(msk)."""
    k = pl.program_id(1)

    @pl.when(k == 0)
    def _():
        acc_ref[...] = jnp.zeros_like(acc_ref)

    seq = seq_ref[...].astype(jnp.float32)                     # (B, tn, td)
    msk = msk_ref[...].astype(jnp.float32)                     # (B, tn, 1)
    weighted = seq * msk                                       # lane-splat on VPU
    if n_total % tn != 0:                                      # tail block mask
        rows_left = n_total - k * tn
        row_ids = lax.broadcasted_iota(
            jnp.int32, (seq.shape[0], seq.shape[1], 1), 1)
        weighted = jnp.where(row_ids < rows_left, weighted, 0.0)
    acc_ref[...] += jnp.sum(weighted, axis=1)                  # (B, td)

    @pl.when(k == pl.num_programs(1) - 1)
    def _():
        inv = 1.0 / msum_ref[0]                                # one scalar divide
        out_ref[...] = (acc_ref[...] * inv).astype(out_ref.dtype)


# ----------------------------- tiling ----------------------------------------


def _choose_tiles(B, N, D, itemsize):
    """Pick (td, tn): lane tile over D, sublane (reduction) tile over N."""
    # D tile: multiple of 128 lanes that divides D exactly when possible.
    td = D
    if D % 128 == 0:
        best = 128
        for cand in range(128, min(D, 2048) + 1, 128):
            if D % cand == 0:
                best = cand
        td = best
    # N tile: one streaming seq buffer <= ~8 MiB, so double-buffered inputs
    # plus accumulators stay well under v7x's 64 MiB VMEM.
    align = 8 if itemsize >= 4 else (16 if itemsize == 2 else 32)
    budget_bytes = 8 * 1024 * 1024
    tn = budget_bytes // max(1, B * td * itemsize)
    tn = min(tn, 4096, N)
    if tn < N:
        tn = max(align, (tn // align) * align)
    else:
        tn = N  # full reduction axis fits in one block
    return td, tn


# ----------------------------- wrapper ---------------------------------------


def avg_readout(seq, msk=None):
    """Pallas implementation of AvgReadout.forward(seq, msk)."""
    B, N, D = seq.shape
    td, tn = _choose_tiles(B, N, D, seq.dtype.itemsize)
    grid = (pl.cdiv(D, td), pl.cdiv(N, tn))   # (parallel D, reduction N last)
    cparams = pltpu.CompilerParams(
        dimension_semantics=("parallel", "arbitrary"),
        vmem_limit_bytes=48 * 1024 * 1024,    # < 64 MiB (v7x), > 32 MiB default
    )

    if msk is None:
        kernel = functools.partial(
            _mean_readout_kernel, n_total=N, tn=tn, inv_n=1.0 / N)
        return pl.pallas_call(
            kernel,
            out_shape=jax.ShapeDtypeStruct((B, D), seq.dtype),
            grid_spec=pltpu.PrefetchScalarGridSpec(
                num_scalar_prefetch=0,
                grid=grid,
                in_specs=[pl.BlockSpec((B, tn, td), lambda d, k: (0, k, d))],
                out_specs=pl.BlockSpec((B, td), lambda d, k: (0, d)),
                scratch_shapes=[pltpu.VMEM((B, td), jnp.float32)],
            ),
            compiler_params=cparams,
        )(seq)

    assert msk.shape == (B, N)
    # (B, N, 1): N on sublanes (matches seq), D-broadcast is a lane splat.
    msk3 = msk.reshape(B, N, 1)
    # Global scalar sum(msk) computed once, fed via scalar prefetch (SMEM).
    msum = jnp.sum(msk.astype(jnp.float32)).reshape(1)
    kernel = functools.partial(_masked_readout_kernel, n_total=N, tn=tn)
    return pl.pallas_call(
        kernel,
        out_shape=jax.ShapeDtypeStruct((B, D), seq.dtype),
        grid_spec=pltpu.PrefetchScalarGridSpec(
            num_scalar_prefetch=1,
            grid=grid,
            in_specs=[
                pl.BlockSpec((B, tn, td), lambda d, k, s: (0, k, d)),
                pl.BlockSpec((B, tn, 1), lambda d, k, s: (0, k, 0)),
            ],
            out_specs=pl.BlockSpec((B, td), lambda d, k, s: (0, d)),
            scratch_shapes=[pltpu.VMEM((B, td), jnp.float32)],
        ),
        compiler_params=cparams,
    )(msum, seq, msk3)


# ----------------------------- test ------------------------------------------

if __name__ == "__main__":
    key = jax.random.PRNGKey(0)
    k_seq, k_msk = jax.random.split(key)

    B, N, D = 2, 8, 32
    seq = jax.random.normal(k_seq, (B, N, D), dtype=jnp.float32)
    # binary-ish node mask, like DGI
    msk = (jax.random.uniform(k_msk, (B, N)) > 0.3).astype(jnp.float32)

    # masked path
    out_masked = jax.block_until_ready(avg_readout(seq, msk))
    ref_masked = jnp.sum(seq * msk[:, :, None], axis=1) / jnp.sum(msk)
    np.testing.assert_allclose(np.asarray(out_masked), np.asarray(ref_masked),
                               rtol=1e-5, atol=1e-5)

    # msk=None path (plain mean over axis 1)
    out_mean = jax.block_until_ready(avg_readout(seq, None))
    ref_mean = jnp.mean(seq, axis=1)
    np.testing.assert_allclose(np.asarray(out_mean), np.asarray(ref_mean),
                               rtol=1e-5, atol=1e-5)

    # exercise the tiled / tail-masked path with a larger, non-divisible N
    B2, N2, D2 = 2, 1000, 256
    seq2 = jax.random.normal(k_seq, (B2, N2, D2), dtype=jnp.float32)
    msk2 = (jax.random.uniform(k_msk, (B2, N2)) > 0.5).astype(jnp.float32)
    out2 = jax.block_until_ready(avg_readout(seq2, msk2))
    ref2 = jnp.sum(seq2 * msk2[:, :, None], axis=1) / jnp.sum(msk2)
    np.testing.assert_allclose(np.asarray(out2), np.asarray(ref2),
                               rtol=1e-4, atol=1e-4)

    print("KERNEL_OK")
</pallas_src>

<mosaic_0001>
module attributes {stable_mosaic.version = 11 : i64} {
  func.func @_masked_readout_kernel(%arg0: i32, %arg1: i32, %arg2: memref<1xf32, #tpu.memory_space<smem>>, %arg3: memref<2x8x32xf32, #tpu.memory_space<vmem>>, %arg4: memref<2x8x1xf32, #tpu.memory_space<vmem>>, %arg5: memref<2x32xf32, #tpu.memory_space<vmem>>, %arg6: memref<2x32xf32, #tpu.memory_space<vmem>>) attributes {dimension_semantics = [#tpu.dimension_semantics<parallel>, #tpu.dimension_semantics<arbitrary>], iteration_bounds = array<i64: 1, 1>, scalar_prefetch = 1 : i64, scratch_operands = 1 : i64, tpu.core_type = #tpu.core_type<tc>, window_params = [{transform_indices = @transform_0, window_bounds = array<i64: 2, 8, 32>}, {transform_indices = @transform_1, window_bounds = array<i64: 2, 8, 1>}, {transform_indices = @transform_2, window_bounds = array<i64: 2, 32>}]} {
    %c0_i32 = arith.constant 0 : i32
    %0 = arith.cmpi eq, %arg1, %c0_i32 : i32
    %1 = arith.extui %0 : i1 to i32
    %c0_i32_0 = arith.constant 0 : i32
    %2 = arith.cmpi ne, %1, %c0_i32_0 : i32
    scf.if %2 {
      %cst_12 = arith.constant 0.000000e+00 : f32
      %14 = vector.broadcast %cst_12 : f32 to vector<2x32xf32>
      %c0_13 = arith.constant 0 : index
      %c0_14 = arith.constant 0 : index
      %15 = vector.load %arg6[%c0_13, %c0_14] : memref<2x32xf32, #tpu.memory_space<vmem>>, vector<2x32xf32>
      tpu.vector_store %arg6[%c0_13, %c0_14], %14 {strides = array<i32>} : memref<2x32xf32, #tpu.memory_space<vmem>>, vector<2x32xf32>,
    } else {
    }
    %c0 = arith.constant 0 : index
    %c0_1 = arith.constant 0 : index
    %c0_2 = arith.constant 0 : index
    %3 = vector.load %arg3[%c0, %c0_1, %c0_2] : memref<2x8x32xf32, #tpu.memory_space<vmem>>, vector<2x8x32xf32>
    %c0_3 = arith.constant 0 : index
    %c0_4 = arith.constant 0 : index
    %c0_5 = arith.constant 0 : index
    %4 = vector.load %arg4[%c0_3, %c0_4, %c0_5] : memref<2x8x1xf32, #tpu.memory_space<vmem>>, vector<2x8x1xf32>
    %5 = vector.broadcast %4 : vector<2x8x1xf32> to vector<2x8x32xf32>
    %6 = arith.mulf %3, %5 : vector<2x8x32xf32>
    %c0_6 = arith.constant 0 : index
    %c0_7 = arith.constant 0 : index
    %7 = vector.load %arg6[%c0_6, %c0_7] : memref<2x32xf32, #tpu.memory_space<vmem>>, vector<2x32xf32>
    %cst = arith.constant dense<0.000000e+00> : vector<2x32xf32>
    %8 = vector.multi_reduction <add>, %6, %cst [1] : vector<2x8x32xf32> to vector<2x32xf32>
    %9 = arith.addf %7, %8 : vector<2x32xf32>
    %c0_8 = arith.constant 0 : index
    %c0_9 = arith.constant 0 : index
    %10 = vector.load %arg6[%c0_8, %c0_9] : memref<2x32xf32, #tpu.memory_space<vmem>>, vector<2x32xf32>
    tpu.vector_store %arg6[%c0_8, %c0_9], %9 {strides = array<i32>} : memref<2x32xf32, #tpu.memory_space<vmem>>, vector<2x32xf32>,
    %c0_i32_10 = arith.constant 0 : i32
    %11 = arith.cmpi eq, %arg1, %c0_i32_10 : i32
    %12 = arith.extui %11 : i1 to i32
    %c0_i32_11 = arith.constant 0 : i32
    %13 = arith.cmpi ne, %12, %c0_i32_11 : i32
    scf.if %13 {
      %c0_12 = arith.constant 0 : index
      %14 = memref.load %arg2[%c0_12] : memref<1xf32, #tpu.memory_space<smem>>
      %cst_13 = arith.constant 1.000000e+00 : f32
      %15 = arith.divf %cst_13, %14 : f32
      %c0_14 = arith.constant 0 : index
      %c0_15 = arith.constant 0 : index
      %16 = vector.load %arg6[%c0_14, %c0_15] : memref<2x32xf32, #tpu.memory_space<vmem>>, vector<2x32xf32>
      %17 = vector.broadcast %15 : f32 to vector<2x32xf32>
      %18 = arith.mulf %16, %17 : vector<2x32xf32>
      %c0_16 = arith.constant 0 : index
      %c0_17 = arith.constant 0 : index
      %19 = vector.load %arg5[%c0_16, %c0_17] : memref<2x32xf32, #tpu.memory_space<vmem>>, vector<2x32xf32>
      tpu.vector_store %arg5[%c0_16, %c0_17], %18 {strides = array<i32>} : memref<2x32xf32, #tpu.memory_space<vmem>>, vector<2x32xf32>,
    } else {
    }
    return
  }
  func.func @transform_0(%arg0: i32, %arg1: i32, %arg2: memref<1xf32, #tpu.memory_space<smem>>) -> (i32, i32, i32) {
    %c0_i32 = arith.constant 0 : i32
    %c0_i32_0 = arith.constant 0 : i32
    return %c0_i32, %arg1, %arg0 : i32, i32, i32
  }
  func.func @transform_1(%arg0: i32, %arg1: i32, %arg2: memref<1xf32, #tpu.memory_space<smem>>) -> (i32, i32, i32) {
    %c0_i32 = arith.constant 0 : i32
    %c0_i32_0 = arith.constant 0 : i32
    %c0_i32_1 = arith.constant 0 : i32
    return %c0_i32, %arg1, %c0_i32_0 : i32, i32, i32
  }
  func.func @transform_2(%arg0: i32, %arg1: i32, %arg2: memref<1xf32, #tpu.memory_space<smem>>) -> (i32, i32) {
    %c0_i32 = arith.constant 0 : i32
    %c0_i32_0 = arith.constant 0 : i32
    return %c0_i32, %arg0 : i32, i32
  }
}

</mosaic_0001>

<bundles_post_ra>
// kernel: tpu_custom_call.1
= control target key start
LH: loop header
LB: loop body
LE: loop exit
PB: predicated region body
PF: predicated region fallthrough
CT: control target
= control target key end

     0   :  { %s178_s0 = inlined_call_operand.<no memory space> [shape: f32[1], index: 0, kind: input, shape index: {}]   ;;  %s179_s1 = inlined_call_operand.vmem [shape: f32[2,8,32], index: 1, kind: input, shape index: {}]   ;;  %s180_s2 = inlined_call_operand.vmem [shape: f32[2,8,1], index: 2, kind: input, shape index: {}]   ;;  %s181_s3 = inlined_call_operand.hbm [shape: f32[2,32], index: 3, kind: output, shape index: {}]  }
   0x1   :  { %v22_v0 = vld [vmem:[%s180_s2] sm:$0xff]  ;;  %v64_v1 = vstv %s178_s0 }
   0x2   :  { %9 = vsyncpa [#allocation6], 0  ;;  %v134_v2 = vmov 0   ;;  %106 = vrcp.f32 %v64_v1  ;;  %v23_v4 = vld [vmem:[%s180_s2 + $0x8] sm:$0xff]  ;;  %v76_v6 = vand.u32 2147483648, %v64_v1  ;;  %vm70_vm0 = vweird.f32 %v64_v1  ;;  %v20_v15 = vld [vmem:[%s179_s1] sm:$0xff] }
   0x3   :  { %105 = vset.pattern.permute.xlu0 %v134_v2  ;;  %v74_v8 = vand.u32 2147483647, %v64_v1  ;;  %vm18_vm4 = vcmask 254976   ;;  %v135_v14 = vmov 0.0   ;;  %vm37_vm5 = vcmask 261120   ;;  %v21_v21 = vld [vmem:[%s179_s1 + $0x8] sm:$0xff] }
   0x4   :  { %26 = vperm.xlu0 %105, %v22_v0   ;;  %v77_v10 = vor.u32 1.1754944e-38, %v76_v6  ;;  %19 = vst.msk [vmem:[#allocation2] sm:$0x3] %vm18_vm4, %v135_v14  ;;  %vm54_vm6 = vcmask 1041409   ;;  %s136_s20 = smov [#allocation5]   ;;  %s91_s24 = sshll.u32 %s181_s3, 4  ;;  %s92_s24 = int_to_ptr.hbm [resolvable:$true] %s91_s24 }
   0x5   :  { %vm75_vm3 = vcmp.eq.f32.partialorder %v74_v8, 8.507059e+37  ;;  %s89_s21 = sshll.u32 %s136_s20, 4  ;;  %s90_s21 = int_to_ptr.vmem [resolvable:$true] %s89_s21 }
   0x8   :  { %v107_v3 = vpop.eup %106 }
   0x9   :  { %v66_v5 = vmul.f32 %v107_v3, %v64_v1  ;;  %vm71_vm1 = vweird.f32 %v107_v3 }
   0xa   :  { %vm72_vm2 = vmor %vm70_vm0, %vm71_vm1 }
   0xb   :  { %v67_v7 = vsub.f32 1.0, %v66_v5  ;;  %v36_v35 = vld [vmem:[#allocation2] sm:$0x3] }
   0xc   :  { %31 = vperm.xlu0 %105, %v23_v4  }
   0xd   :  { %v68_v9 = vmul.f32 %v107_v3, %v67_v7 }
   0xf   :  { %v69_v11 = vadd.f32 %v107_v3, %v68_v9 }
  0x11   :  { %v73_v12 = vsel %vm72_vm2, %v107_v3, %v69_v11 }
  0x12   :  { %v78_v13 = vsel %vm75_vm3, %v77_v10, %v73_v12 }
  0x13   :  { %100 = vpush %v78_v13 }
  0x44   :  { %s101_s1 = spop %100 }
  0x45   :  { %v81_v38 = vstv %s101_s1 }
  0x76   :  { %v27_v16 = vpop.permute.xlu0 %26 }
  0x77   :  { %v34_v17 = vmul.f32 %v27_v16, %v20_v15 }
  0x79   :  { %v38_v18 = vsel %vm37_vm5, %v34_v17, 0.0 }
  0x7a   :  { %v39_v19 = vrot.slane %v38_v18, 4 }
  0x7c   :  { %v40_v20 = vadd.f32 %v39_v19, %v38_v18 }
  0x7e   :  { %v32_v22 = vpop.permute.xlu0 %31  ;;  %v41_v24 = vrot.slane %v40_v20, 2 }
  0x7f   :  { %v35_v23 = vmul.f32 %v32_v22, %v21_v21 }
  0x80   :  { %v42_v27 = vadd.f32 %v41_v24, %v40_v20 }
  0x81   :  { %v45_v25 = vsel %vm37_vm5, %v35_v23, 0.0 }
  0x82   :  { %v46_v26 = vrot.slane %v45_v25, 4  ;;  %v43_v30 = vrot.slane %v42_v27, 1 }
  0x84   :  { %v47_v28 = vadd.f32 %v46_v26, %v45_v25  ;;  %v44_v33 = vadd.f32 %v43_v30, %v42_v27 }
  0x86   :  { %v48_v29 = vrot.slane %v47_v28, 2 }
  0x88   :  { %v49_v31 = vadd.f32 %v48_v29, %v47_v28 }
  0x8a   :  { %v50_v32 = vrot.slane %v49_v31, 1 }
  0x8c   :  { %v51_v34 = vadd.f32 %v50_v32, %v49_v31 }
  0x8e   :  { %v55_v36 = vsel %vm54_vm6, %v51_v34, %v44_v33 }
  0x8f   :  { %v57_v37 = vadd.f32 %v55_v36, %v36_v35 }
  0x91   :  { %59 = vst.msk [vmem:[#allocation2] sm:$0x3] %vm18_vm4, %v57_v37 }
  0x98   :  { %v80_v39 = vld [vmem:[#allocation2] sm:$0x3] }
  0x99   :  { %v82_v40 = vmul.f32 %v81_v38, %v80_v39 }
  0x9b   :  { %83 = vst.msk [vmem:[#allocation5] sm:$0x3] %vm18_vm4, %v82_v40 }
  0x9c   :  { %94 = dma.vmem_to_hbm [thread:$0]  %s90_s21, 32, %s92_s24, [#allocation6]  }
  0x9d   :  { %132 = dma.done.wait [#allocation6], 32  }
  0x9e   :  { %133 = vsyncadd [#allocation6], 4294967264 }
  0x9f   :  { %99 = vsyncpa [#allocation6], 1 }

</bundles_post_ra>
